<compile_context>
chip_gen: v7x
topology: tpu7x:2x2x1
jax: 0.10.0
libtpu: 0.0.40
codegen_flags: <defaults>
</compile_context>

<pallas_src>
import functools

import jax
import jax.numpy as jnp
from jax import lax
from jax.experimental import pallas as pl
from jax.experimental.pallas import tpu as pltpu

VOCAB = 49408  # fixed by the module's nn.CrossEntropyLoss(weight=torch.ones(49408))


# ----------------------------------------------------------------------------
# Kernel 1: fused CLIP contrastive losses (fMRI-image and fMRI-text)
# ----------------------------------------------------------------------------
def clip_loss_kernel(scale_ref, f_ref, img_ref, txt_ref, out_ref):
    scale = scale_ref[0, 0]
    # Pre-scale the fMRI features once ([N, D]) instead of scaling both full
    # [N, N] logits tiles and both diagonals.
    f = f_ref[...].astype(jnp.float32) * scale
    img = img_ref[...].astype(jnp.float32)
    txt = txt_ref[...].astype(jnp.float32)
    n = f.shape[0]

    # Contract the feature dim directly (no explicit transpose of the rhs).
    # NOTE: if Mosaic inserts a layout transpose here at production sizes, present
    # the features pre-transposed as [D, N] from the wrapper instead.
    dims = (((1,), (1,)), ((), ()))
    logits_fi = lax.dot_general(f, img, dims, preferred_element_type=jnp.float32)  # [N,N]
    logits_ft = lax.dot_general(f, txt, dims, preferred_element_type=jnp.float32)  # [N,N]

    # Matching-pair (diagonal) logits via elementwise product + lane reduction.
    diag_i = jnp.sum(f * img, axis=1, keepdims=True)   # [N, 1]
    diag_t = jnp.sum(f * txt, axis=1, keepdims=True)   # [N, 1]

    def row_lse(mat):   # [N, N] -> [N, 1]   lane reduction
        mx = jnp.max(mat, axis=1, keepdims=True)
        return jnp.log(jnp.sum(jnp.exp(mat - mx), axis=1, keepdims=True)) + mx

    def col_lse(mat):   # [N, N] -> [1, N]   sublane reduction (reuses the same tile,
        mx = jnp.max(mat, axis=0, keepdims=True)        # no second / transposed matmul)
        return jnp.log(jnp.sum(jnp.exp(mat - mx), axis=0, keepdims=True)) + mx

    # CE(logits_per_image, arange) + CE(logits_per_text = logits_per_image.T, arange)
    loss_fi = (jnp.sum(row_lse(logits_fi), keepdims=True)
               + jnp.sum(col_lse(logits_fi), keepdims=True)
               - 2.0 * jnp.sum(diag_i, keepdims=True)) * (0.5 / n)      # (1, 1)
    loss_ft = (jnp.sum(row_lse(logits_ft), keepdims=True)
               + jnp.sum(col_lse(logits_ft), keepdims=True)
               - 2.0 * jnp.sum(diag_t, keepdims=True)) * (0.5 / n)      # (1, 1)

    sub = lax.broadcasted_iota(jnp.int32, (8, 128), 0)
    lane = lax.broadcasted_iota(jnp.int32, (8, 128), 1)
    out_ref[...] = (jnp.where((sub == 0) & (lane == 0), loss_fi, 0.0)
                    + jnp.where((sub == 0) & (lane == 1), loss_ft, 0.0))


def clip_losses_pallas(fmri_features, image_features, text_features, logit_scale):
    """Returns (clip_loss_fi, clip_loss_ft) from one fused pallas_call."""
    n, d = fmri_features.shape
    scale = jnp.asarray(logit_scale, jnp.float32).reshape(1, 1)
    out = pl.pallas_call(
        clip_loss_kernel,
        out_shape=jax.ShapeDtypeStruct((8, 128), jnp.float32),
        grid=(1,),
        in_specs=[
            pl.BlockSpec(memory_space=pltpu.SMEM),        # logit_scale scalar
            pl.BlockSpec((n, d), lambda i: (0, 0)),        # fMRI features
            pl.BlockSpec((n, d), lambda i: (0, 0)),        # image features
            pl.BlockSpec((n, d), lambda i: (0, 0)),        # text features
        ],
        out_specs=pl.BlockSpec((8, 128), lambda i: (0, 0)),
        compiler_params=pltpu.CompilerParams(dimension_semantics=("arbitrary",)),
    )(scale, fmri_features, image_features, text_features)
    return out[0, 0], out[0, 1]


# ----------------------------------------------------------------------------
# Kernel 2: weighted caption cross-entropy over the vocab (partial sums per block)
# ----------------------------------------------------------------------------
def caption_loss_kernel(labels_ref, logits_ref, out_ref, *, pad_id, row_tile,
                        scalar_gather):
    i = pl.program_id(0)
    row0 = i * row_tile

    x = logits_ref[...].astype(jnp.float32)                  # [row_tile, V]
    tr, v = x.shape

    # Full-precision f32 logsumexp (no bf16 round-trip).
    m = jnp.max(x, axis=1, keepdims=True)                    # [tr, 1]
    lse = jnp.log(jnp.sum(jnp.exp(x - m), axis=1, keepdims=True)) + m   # raw lse [tr,1]

    sub = lax.broadcasted_iota(jnp.int32, (tr, 1), 0)

    if scalar_gather:
        # Scalar-driven target gather: label from SMEM, one 128-aligned dynamic lane
        # slice of the VMEM block per row, remainder selected in a (1, 128) vreg.
        lane128 = lax.broadcasted_iota(jnp.int32, (1, 128), 1)

        def body(r, carry):
            tgt_col, w_col = carry
            lbl = labels_ref[row0 + r]                        # scalar int32 (SMEM)
            base = pl.multiple_of((lbl // 128) * 128, 128)
            rem = lbl - base
            chunk = logits_ref[pl.ds(r, 1), pl.ds(base, 128)].astype(jnp.float32)
            tgt = jnp.sum(jnp.where(lane128 == rem, chunk, 0.0), keepdims=True)  # (1,1)
            w = (lbl != pad_id).astype(jnp.float32)           # class weight (pad -> 0)
            rowmask = sub == r
            return (jnp.where(rowmask, tgt, tgt_col),
                    jnp.where(rowmask, w, w_col))

        tgt_col, w_col = lax.fori_loop(
            0, tr, body,
            (jnp.zeros((tr, 1), jnp.float32), jnp.zeros((tr, 1), jnp.float32)),
            unroll=True)
    else:
        # Compile-safe fallback: vectorized one-hot gather over the full tile.
        def body(r, lbl_col):
            return jnp.where(sub == r, labels_ref[row0 + r], lbl_col)

        lbl_col = lax.fori_loop(0, tr, body, jnp.zeros((tr, 1), jnp.int32),
                                unroll=True)
        lane = lax.broadcasted_iota(jnp.int32, (tr, v), 1)
        tgt_col = jnp.sum(jnp.where(lane == lbl_col, x, 0.0), axis=1, keepdims=True)
        w_col = (lbl_col != pad_id).astype(jnp.float32)

    num = jnp.sum(w_col * (lse - tgt_col), keepdims=True)     # (1,1) weighted CE sum
    den = jnp.sum(w_col, keepdims=True)                       # (1,1) weight sum

    # Lane-dense per-block partial output: [num, den, 0, 0, ...] in row 0.
    sub8 = lax.broadcasted_iota(jnp.int32, (8, 128), 0)
    lane8 = lax.broadcasted_iota(jnp.int32, (8, 128), 1)
    out_ref[0] = (jnp.where((sub8 == 0) & (lane8 == 0), num, 0.0)
                  + jnp.where((sub8 == 0) & (lane8 == 1), den, 0.0))


def _vmem_capacity_bytes():
    cap = 64 * 1024 * 1024   # conservative default (v7x per-TC VMEM)
    try:
        info = pltpu.get_tpu_info()
        for attr in ("vmem_capacity_bytes", "vmem_bytes", "vmem_size_bytes"):
            val = getattr(info, attr, None)
            if val:
                return int(val)
    except Exception:
        pass
    return cap


def _default_caption_tiling(itemsize):
    cap = _vmem_capacity_bytes()
    if cap >= 96 * 1024 * 1024:          # v5e / v6e: 128 MiB physical VMEM
        row_tile, vmem_limit = 64, 100 * 1024 * 1024
    else:                                # v7x: 64 MiB physical VMEM
        row_tile, vmem_limit = 32, 48 * 1024 * 1024
    if itemsize <= 2:                    # bf16 logits stream at half the bytes
        row_tile *= 2
    return row_tile, vmem_limit


def _pick_row_tile(r, requested):
    """Largest tile <= requested dividing r, multiple of 8 (or == r); prefer an even
    block count >= 2 so both v7x TensorCores get work (neutral on v5e/v6e)."""
    def ok(t):
        return r % t == 0 and (t % 8 == 0 or t == r)

    cands = [t for t in range(min(requested, r), 0, -1) if ok(t)]
    if not cands:
        return r
    for t in cands:
        nb = r // t
        if nb >= 2 and nb % 2 == 0:
            return t
    for t in cands:
        if r // t >= 2:
            return t
    return cands[0]


# Cache which caption kernel variant lowers on this Mosaic build.
_CAPTION_SCALAR_GATHER = None


def caption_loss_pallas(logits, labels, pad_id, row_tile=None, vmem_limit_bytes=None):
    # logits: [N, T, V] (f32 or bf16 -- streamed in the source dtype), labels: [N, T] int
    global _CAPTION_SCALAR_GATHER
    n, t, v = logits.shape
    assert v == VOCAB
    r = n * t

    itemsize = jnp.dtype(logits.dtype).itemsize
    d_rt, d_vmem = _default_caption_tiling(itemsize)
    row_tile = _pick_row_tile(r, row_tile or d_rt)
    vmem_limit_bytes = vmem_limit_bytes or d_vmem
    nb = r // row_tile

    logits2d = logits.reshape(r, v)                    # keep source dtype (bf16 stays bf16)
    labels_flat = labels.reshape(r).astype(jnp.int32)  # scalar-prefetched into SMEM

    cost = pl.CostEstimate(
        flops=6 * r * v,
        transcendentals=r * v,
        bytes_accessed=r * v * itemsize + r * 4 + nb * 8 * 128 * 4,
    )

    def run(scalar_gather):
        grid_spec = pltpu.PrefetchScalarGridSpec(
            num_scalar_prefetch=1,                     # labels -> SMEM
            grid=(nb,),
            in_specs=[pl.BlockSpec((row_tile, v), lambda i, lbl: (i, 0))],
            out_specs=pl.BlockSpec((1, 8, 128), lambda i, lbl: (i, 0, 0)),
        )
        return pl.pallas_call(
            functools.partial(caption_loss_kernel, pad_id=pad_id,
                              row_tile=row_tile, scalar_gather=scalar_gather),
            out_shape=jax.ShapeDtypeStruct((nb, 8, 128), jnp.float32),
            grid_spec=grid_spec,
            compiler_params=pltpu.CompilerParams(
                dimension_semantics=("parallel",),     # megacore-shardable
                vmem_limit_bytes=vmem_limit_bytes,
            ),
            cost_estimate=cost,
        )(labels_flat, logits2d)

    # Prefer the scalar-gather kernel; fall back to the vectorized one-hot kernel if
    # this Mosaic build rejects the dynamic lane-aligned slice.  (Under jit, set
    # _CAPTION_SCALAR_GATHER explicitly instead of relying on the eager try/except.)
    modes = ([True, False] if _CAPTION_SCALAR_GATHER is None
             else [_CAPTION_SCALAR_GATHER])
    partials, err = None, None
    for mode in modes:
        try:
            partials = jax.block_until_ready(run(mode))
            _CAPTION_SCALAR_GATHER = mode
            break
        except Exception as e:      # lowering / compile fallback only
            err = e
            partials = None
    if partials is None:
        raise err

    num = jnp.sum(partials[:, 0, 0])
    den = jnp.sum(partials[:, 0, 1])
    # NOTE: if every token is pad_id, den == 0 and the result is NaN — matches
    # torch.nn.CrossEntropyLoss(weight=...) behavior.
    return num / den


# ----------------------------------------------------------------------------
# FCoCaLoss forward (world_size=1, no mixco), Pallas-backed
# ----------------------------------------------------------------------------
class FCoCaLossPallas:
    def __init__(self, caption_loss_weight, clip_loss_weight,
                 fi_contrastive_loss_weight, ft_contrastive_loss_weight, pad_id=0):
        self.caption_loss_weight = caption_loss_weight
        self.clip_loss_weight = clip_loss_weight
        self.fi_contrastive_loss_weight = fi_contrastive_loss_weight
        self.ft_contrastive_loss_weight = ft_contrastive_loss_weight
        self.pad_id = pad_id
        # caption CE class weights: ones(49408) with weight[pad_id] = 0,
        # realized exactly inside caption_loss_kernel via (label != pad_id).

    def __call__(self, image_features, fmri_features, text_features,
                 logits, labels, logit_scale, output_dict=False):
        losses = {}

        if self.clip_loss_weight:
            clip_fi, clip_ft = clip_losses_pallas(
                fmri_features, image_features, text_features, logit_scale)
            clip_fi = self.clip_loss_weight * clip_fi
            clip_ft = self.clip_loss_weight * clip_ft
        else:
            clip_fi = jnp.float32(0.0)
            clip_ft = jnp.float32(0.0)

        # caption loss computed exactly once (the reference computed it twice with
        # identical inputs and discarded the second, identical result).
        caption_loss = caption_loss_pallas(logits, labels, self.pad_id)
        caption_loss = caption_loss * self.caption_loss_weight

        if self.fi_contrastive_loss_weight or self.ft_contrastive_loss_weight:
            losses['con (fi)'] = clip_fi * self.fi_contrastive_loss_weight
            losses['con (ft)'] = clip_ft * self.ft_contrastive_loss_weight
        if self.caption_loss_weight:
            losses['cap'] = caption_loss
        return losses if output_dict else list(losses.values())


# ----------------------------------------------------------------------------
# Pure-JAX reference for a sanity check
# ----------------------------------------------------------------------------
def _ref_clip(f, x, scale):
    m = scale * (f @ x.T)
    n = f.shape[0]
    idx = jnp.arange(n)
    li = -jax.nn.log_softmax(m, axis=-1)[idx, idx].mean()
    lt = -jax.nn.log_softmax(m.T, axis=-1)[idx, idx].mean()
    return 0.5 * (li + lt)


def _ref_caption(logits, labels, pad_id):
    n, t, v = logits.shape
    lg = logits.reshape(n * t, v).astype(jnp.float32)
    lb = labels.reshape(n * t)
    logp = jax.nn.log_softmax(lg, axis=-1)
    tgt = jnp.take_along_axis(logp, lb[:, None], axis=1)[:, 0]
    w = (lb != pad_id).astype(jnp.float32)
    return -jnp.sum(w * tgt) / jnp.sum(w)


if __name__ == "__main__":
    key = jax.random.PRNGKey(0)
    k_img, k_fmri, k_txt, k_log, k_lab = jax.random.split(key, 5)

    N, D, T, V = 8, 32, 8, VOCAB
    pad_id = 0

    def _norm(v):
        return v / jnp.linalg.norm(v, axis=-1, keepdims=True)

    image_features = _norm(jax.random.normal(k_img, (N, D), jnp.float32))
    fmri_features = _norm(jax.random.normal(k_fmri, (N, D), jnp.float32))
    text_features = _norm(jax.random.normal(k_txt, (N, D), jnp.float32))
    logits = jax.random.normal(k_log, (N, T, V), jnp.float32)
    labels = jax.random.randint(k_lab, (N, T), 0, V, jnp.int32)
    labels = labels.at[:, 0].set(pad_id)   # some padded tokens (ignored via weight=0)
    logit_scale = jnp.float32(5.0)

    loss_mod = FCoCaLossPallas(
        caption_loss_weight=2.0,
        clip_loss_weight=1.0,
        fi_contrastive_loss_weight=0.5,
        ft_contrastive_loss_weight=0.5,
        pad_id=pad_id,
    )

    out = loss_mod(image_features, fmri_features, text_features,
                   logits, labels, logit_scale, output_dict=True)
    out = jax.block_until_ready(out)

    # sanity check against pure-JAX reference
    ref_fi = 0.5 * (1.0 * _ref_clip(fmri_features, image_features, logit_scale))
    ref_ft = 0.5 * (1.0 * _ref_clip(fmri_features, text_features, logit_scale))
    ref_cap = 2.0 * _ref_caption(logits, labels, pad_id)
    assert jnp.allclose(out['con (fi)'], ref_fi, rtol=1e-2, atol=1e-2)
    assert jnp.allclose(out['con (ft)'], ref_ft, rtol=1e-2, atol=1e-2)
    assert jnp.allclose(out['cap'], ref_cap, rtol=1e-2, atol=1e-2)

    print("KERNEL_OK")
</pallas_src>

<mosaic_0001>
module attributes {stable_mosaic.version = 11 : i64} {
  func.func @clip_loss_kernel(%arg0: i32, %arg1: memref<1x1xf32, #tpu.memory_space<smem>>, %arg2: memref<8x32xf32, #tpu.memory_space<vmem>>, %arg3: memref<8x32xf32, #tpu.memory_space<vmem>>, %arg4: memref<8x32xf32, #tpu.memory_space<vmem>>, %arg5: memref<8x128xf32, #tpu.memory_space<vmem>>) attributes {dimension_semantics = [#tpu.dimension_semantics<arbitrary>], iteration_bounds = array<i64: 1>, scalar_prefetch = 0 : i64, scratch_operands = 0 : i64, tpu.core_type = #tpu.core_type<tc>, window_params = [{transform_indices = @transform_0, window_bounds = array<i64: 1, 1>}, {pipeline_mode = #tpu.pipeline_mode<synchronous>, transform_indices = @transform_1, window_bounds = array<i64: 8, 32>}, {pipeline_mode = #tpu.pipeline_mode<synchronous>, transform_indices = @transform_2, window_bounds = array<i64: 8, 32>}, {pipeline_mode = #tpu.pipeline_mode<synchronous>, transform_indices = @transform_3, window_bounds = array<i64: 8, 32>}, {pipeline_mode = #tpu.pipeline_mode<synchronous>, transform_indices = @transform_4, window_bounds = array<i64: 8, 128>}]} {
    %c0 = arith.constant 0 : index
    %c0_0 = arith.constant 0 : index
    %0 = memref.load %arg1[%c0, %c0_0] : memref<1x1xf32, #tpu.memory_space<smem>>
    %c0_1 = arith.constant 0 : index
    %c0_2 = arith.constant 0 : index
    %1 = vector.load %arg2[%c0_1, %c0_2] : memref<8x32xf32, #tpu.memory_space<vmem>>, vector<8x32xf32>
    %2 = vector.broadcast %0 : f32 to vector<8x32xf32>
    %3 = arith.mulf %1, %2 : vector<8x32xf32>
    %c0_3 = arith.constant 0 : index
    %c0_4 = arith.constant 0 : index
    %4 = vector.load %arg3[%c0_3, %c0_4] : memref<8x32xf32, #tpu.memory_space<vmem>>, vector<8x32xf32>
    %c0_5 = arith.constant 0 : index
    %c0_6 = arith.constant 0 : index
    %5 = vector.load %arg4[%c0_5, %c0_6] : memref<8x32xf32, #tpu.memory_space<vmem>>, vector<8x32xf32>
    %cst = arith.constant dense<0.000000e+00> : vector<8x8xf32>
    %6 = tpu.matmul %3, %4, %cst {dimension_numbers = #tpu.dot_dimension_numbers<[1], [1], [0], [0], [0, 0, 1, 0], [], []>} : vector<8x32xf32>, vector<8x32xf32>, vector<8x8xf32> -> vector<8x8xf32>
    %cst_7 = arith.constant dense<0.000000e+00> : vector<8x8xf32>
    %7 = tpu.matmul %3, %5, %cst_7 {dimension_numbers = #tpu.dot_dimension_numbers<[1], [1], [0], [0], [0, 0, 1, 0], [], []>} : vector<8x32xf32>, vector<8x32xf32>, vector<8x8xf32> -> vector<8x8xf32>
    %8 = arith.mulf %3, %4 : vector<8x32xf32>
    %cst_8 = arith.constant dense<0.000000e+00> : vector<8xf32>
    %9 = vector.multi_reduction <add>, %8, %cst_8 [1] : vector<8x32xf32> to vector<8xf32>
    %10 = vector.shape_cast %9 : vector<8xf32> to vector<8x1xf32>
    %11 = arith.mulf %3, %5 : vector<8x32xf32>
    %cst_9 = arith.constant dense<0.000000e+00> : vector<8xf32>
    %12 = vector.multi_reduction <add>, %11, %cst_9 [1] : vector<8x32xf32> to vector<8xf32>
    %13 = vector.shape_cast %12 : vector<8xf32> to vector<8x1xf32>
    %cst_10 = arith.constant dense<0xFF800000> : vector<8xf32>
    %14 = vector.multi_reduction <maximumf>, %6, %cst_10 [1] : vector<8x8xf32> to vector<8xf32>
    %15 = vector.shape_cast %14 : vector<8xf32> to vector<8x1xf32>
    %16 = vector.broadcast %15 : vector<8x1xf32> to vector<8x8xf32>
    %17 = arith.subf %6, %16 : vector<8x8xf32>
    %18 = math.exp %17 : vector<8x8xf32>
    %cst_11 = arith.constant dense<0.000000e+00> : vector<8xf32>
    %19 = vector.multi_reduction <add>, %18, %cst_11 [1] : vector<8x8xf32> to vector<8xf32>
    %20 = vector.shape_cast %19 : vector<8xf32> to vector<8x1xf32>
    %21 = math.log %20 : vector<8x1xf32>
    %22 = arith.addf %21, %15 : vector<8x1xf32>
    %23 = vector.shape_cast %22 : vector<8x1xf32> to vector<1x8x1xf32>
    %cst_12 = arith.constant dense<0.000000e+00> : vector<1xf32>
    %24 = vector.multi_reduction <add>, %23, %cst_12 [1, 2] : vector<1x8x1xf32> to vector<1xf32>
    %25 = vector.shape_cast %24 : vector<1xf32> to vector<1x1x1xf32>
    %26 = vector.extract %25[0, 0, 0] : f32 from vector<1x1x1xf32>
    %27 = vector.broadcast %26 : f32 to vector<1x1xf32>
    %cst_13 = arith.constant dense<0xFF800000> : vector<8xf32>
    %28 = vector.multi_reduction <maximumf>, %6, %cst_13 [0] : vector<8x8xf32> to vector<8xf32>
    %29 = vector.shape_cast %28 : vector<8xf32> to vector<1x8xf32>
    %30 = vector.broadcast %29 : vector<1x8xf32> to vector<8x8xf32>
    %31 = arith.subf %6, %30 : vector<8x8xf32>
    %32 = math.exp %31 : vector<8x8xf32>
    %cst_14 = arith.constant dense<0.000000e+00> : vector<8xf32>
    %33 = vector.multi_reduction <add>, %32, %cst_14 [0] : vector<8x8xf32> to vector<8xf32>
    %34 = vector.shape_cast %33 : vector<8xf32> to vector<1x8xf32>
    %35 = math.log %34 : vector<1x8xf32>
    %36 = arith.addf %35, %29 : vector<1x8xf32>
    %37 = vector.shape_cast %36 : vector<1x8xf32> to vector<1x1x8xf32>
    %cst_15 = arith.constant dense<0.000000e+00> : vector<1xf32>
    %38 = vector.multi_reduction <add>, %37, %cst_15 [1, 2] : vector<1x1x8xf32> to vector<1xf32>
    %39 = vector.shape_cast %38 : vector<1xf32> to vector<1x1x1xf32>
    %40 = vector.extract %39[0, 0, 0] : f32 from vector<1x1x1xf32>
    %41 = vector.broadcast %40 : f32 to vector<1x1xf32>
    %42 = arith.addf %27, %41 : vector<1x1xf32>
    %43 = vector.shape_cast %10 : vector<8x1xf32> to vector<1x8x1xf32>
    %cst_16 = arith.constant dense<0.000000e+00> : vector<1xf32>
    %44 = vector.multi_reduction <add>, %43, %cst_16 [1, 2] : vector<1x8x1xf32> to vector<1xf32>
    %45 = vector.shape_cast %44 : vector<1xf32> to vector<1x1x1xf32>
    %46 = vector.extract %45[0, 0, 0] : f32 from vector<1x1x1xf32>
    %47 = vector.broadcast %46 : f32 to vector<1x1xf32>
    %cst_17 = arith.constant 2.000000e+00 : f32
    %48 = vector.broadcast %cst_17 : f32 to vector<1x1xf32>
    %49 = arith.mulf %48, %47 : vector<1x1xf32>
    %50 = arith.subf %42, %49 : vector<1x1xf32>
    %cst_18 = arith.constant 6.250000e-02 : f32
    %51 = vector.broadcast %cst_18 : f32 to vector<1x1xf32>
    %52 = arith.mulf %50, %51 : vector<1x1xf32>
    %cst_19 = arith.constant dense<0xFF800000> : vector<8xf32>
    %53 = vector.multi_reduction <maximumf>, %7, %cst_19 [1] : vector<8x8xf32> to vector<8xf32>
    %54 = vector.shape_cast %53 : vector<8xf32> to vector<8x1xf32>
    %55 = vector.broadcast %54 : vector<8x1xf32> to vector<8x8xf32>
    %56 = arith.subf %7, %55 : vector<8x8xf32>
    %57 = math.exp %56 : vector<8x8xf32>
    %cst_20 = arith.constant dense<0.000000e+00> : vector<8xf32>
    %58 = vector.multi_reduction <add>, %57, %cst_20 [1] : vector<8x8xf32> to vector<8xf32>
    %59 = vector.shape_cast %58 : vector<8xf32> to vector<8x1xf32>
    %60 = math.log %59 : vector<8x1xf32>
    %61 = arith.addf %60, %54 : vector<8x1xf32>
    %62 = vector.shape_cast %61 : vector<8x1xf32> to vector<1x8x1xf32>
    %cst_21 = arith.constant dense<0.000000e+00> : vector<1xf32>
    %63 = vector.multi_reduction <add>, %62, %cst_21 [1, 2] : vector<1x8x1xf32> to vector<1xf32>
    %64 = vector.shape_cast %63 : vector<1xf32> to vector<1x1x1xf32>
    %65 = vector.extract %64[0, 0, 0] : f32 from vector<1x1x1xf32>
    %66 = vector.broadcast %65 : f32 to vector<1x1xf32>
    %cst_22 = arith.constant dense<0xFF800000> : vector<8xf32>
    %67 = vector.multi_reduction <maximumf>, %7, %cst_22 [0] : vector<8x8xf32> to vector<8xf32>
    %68 = vector.shape_cast %67 : vector<8xf32> to vector<1x8xf32>
    %69 = vector.broadcast %68 : vector<1x8xf32> to vector<8x8xf32>
    %70 = arith.subf %7, %69 : vector<8x8xf32>
    %71 = math.exp %70 : vector<8x8xf32>
    %cst_23 = arith.constant dense<0.000000e+00> : vector<8xf32>
    %72 = vector.multi_reduction <add>, %71, %cst_23 [0] : vector<8x8xf32> to vector<8xf32>
    %73 = vector.shape_cast %72 : vector<8xf32> to vector<1x8xf32>
    %74 = math.log %73 : vector<1x8xf32>
    %75 = arith.addf %74, %68 : vector<1x8xf32>
    %76 = vector.shape_cast %75 : vector<1x8xf32> to vector<1x1x8xf32>
    %cst_24 = arith.constant dense<0.000000e+00> : vector<1xf32>
    %77 = vector.multi_reduction <add>, %76, %cst_24 [1, 2] : vector<1x1x8xf32> to vector<1xf32>
    %78 = vector.shape_cast %77 : vector<1xf32> to vector<1x1x1xf32>
    %79 = vector.extract %78[0, 0, 0] : f32 from vector<1x1x1xf32>
    %80 = vector.broadcast %79 : f32 to vector<1x1xf32>
    %81 = arith.addf %66, %80 : vector<1x1xf32>
    %82 = vector.shape_cast %13 : vector<8x1xf32> to vector<1x8x1xf32>
    %cst_25 = arith.constant dense<0.000000e+00> : vector<1xf32>
    %83 = vector.multi_reduction <add>, %82, %cst_25 [1, 2] : vector<1x8x1xf32> to vector<1xf32>
    %84 = vector.shape_cast %83 : vector<1xf32> to vector<1x1x1xf32>
    %85 = vector.extract %84[0, 0, 0] : f32 from vector<1x1x1xf32>
    %86 = vector.broadcast %85 : f32 to vector<1x1xf32>
    %cst_26 = arith.constant 2.000000e+00 : f32
    %87 = vector.broadcast %cst_26 : f32 to vector<1x1xf32>
    %88 = arith.mulf %87, %86 : vector<1x1xf32>
    %89 = arith.subf %81, %88 : vector<1x1xf32>
    %cst_27 = arith.constant 6.250000e-02 : f32
    %90 = vector.broadcast %cst_27 : f32 to vector<1x1xf32>
    %91 = arith.mulf %89, %90 : vector<1x1xf32>
    %92 = tpu.iota {dimensions = array<i32: 0>} : vector<8x128xi32>
    %93 = tpu.iota {dimensions = array<i32: 1>} : vector<8x128xi32>
    %c0_i32 = arith.constant 0 : i32
    %94 = vector.broadcast %c0_i32 : i32 to vector<8x128xi32>
    %95 = arith.cmpi eq, %92, %94 : vector<8x128xi32>
    %c0_i32_28 = arith.constant 0 : i32
    %96 = vector.broadcast %c0_i32_28 : i32 to vector<8x128xi32>
    %97 = arith.cmpi eq, %93, %96 : vector<8x128xi32>
    %98 = arith.andi %95, %97 : vector<8x128xi1>
    %cst_29 = arith.constant 0.000000e+00 : f32
    %99 = vector.shape_cast %52 : vector<1x1xf32> to vector<1x1xf32>
    %100 = vector.broadcast %99 : vector<1x1xf32> to vector<8x128xf32>
    %101 = vector.broadcast %cst_29 : f32 to vector<8x128xf32>
    %102 = arith.select %98, %100, %101 : vector<8x128xi1>, vector<8x128xf32>
    %c0_i32_30 = arith.constant 0 : i32
    %103 = vector.broadcast %c0_i32_30 : i32 to vector<8x128xi32>
    %104 = arith.cmpi eq, %92, %103 : vector<8x128xi32>
    %c1_i32 = arith.constant 1 : i32
    %105 = vector.broadcast %c1_i32 : i32 to vector<8x128xi32>
    %106 = arith.cmpi eq, %93, %105 : vector<8x128xi32>
    %107 = arith.andi %104, %106 : vector<8x128xi1>
    %cst_31 = arith.constant 0.000000e+00 : f32
    %108 = vector.shape_cast %91 : vector<1x1xf32> to vector<1x1xf32>
    %109 = vector.broadcast %108 : vector<1x1xf32> to vector<8x128xf32>
    %110 = vector.broadcast %cst_31 : f32 to vector<8x128xf32>
    %111 = arith.select %107, %109, %110 : vector<8x128xi1>, vector<8x128xf32>
    %112 = arith.addf %102, %111 : vector<8x128xf32>
    %c0_32 = arith.constant 0 : index
    %c0_33 = arith.constant 0 : index
    %113 = vector.load %arg5[%c0_32, %c0_33] : memref<8x128xf32, #tpu.memory_space<vmem>>, vector<8x128xf32>
    tpu.vector_store %arg5[%c0_32, %c0_33], %112 {strides = array<i32>} : memref<8x128xf32, #tpu.memory_space<vmem>>, vector<8x128xf32>,
    return
  }
  func.func @transform_0(%arg0: i32) -> (i32, i32) {
    %c0_i32 = arith.constant 0 : i32
    %c0_i32_0 = arith.constant 0 : i32
    %c0_i32_1 = arith.constant 0 : i32
    return %c0_i32, %c0_i32_0 : i32, i32
  }
  func.func @transform_1(%arg0: i32) -> (i32, i32) {
    %c0_i32 = arith.constant 0 : i32
    %c0_i32_0 = arith.constant 0 : i32
    %c0_i32_1 = arith.constant 0 : i32
    return %c0_i32, %c0_i32_0 : i32, i32
  }
  func.func @transform_2(%arg0: i32) -> (i32, i32) {
    %c0_i32 = arith.constant 0 : i32
    %c0_i32_0 = arith.constant 0 : i32
    %c0_i32_1 = arith.constant 0 : i32
    return %c0_i32, %c0_i32_0 : i32, i32
  }
  func.func @transform_3(%arg0: i32) -> (i32, i32) {
    %c0_i32 = arith.constant 0 : i32
    %c0_i32_0 = arith.constant 0 : i32
    %c0_i32_1 = arith.constant 0 : i32
    return %c0_i32, %c0_i32_0 : i32, i32
  }
  func.func @transform_4(%arg0: i32) -> (i32, i32) {
    %c0_i32 = arith.constant 0 : i32
    %c0_i32_0 = arith.constant 0 : i32
    %c0_i32_1 = arith.constant 0 : i32
    return %c0_i32, %c0_i32_0 : i32, i32
  }
}

</mosaic_0001>

<bundles_post_ra>
// kernel: tpu_custom_call.1
= control target key start
LH: loop header
LB: loop body
LE: loop exit
PB: predicated region body
PF: predicated region fallthrough
CT: control target
= control target key end

     0   :  { %10 = vsyncpa [#allocation4], 0  ;;  %s598_s0 = inlined_call_operand.<no memory space> [shape: f32[1,1], index: 0, kind: input, shape index: {}]   ;;  %s599_s1 = inlined_call_operand.hbm [shape: f32[8,32], index: 1, kind: input, shape index: {}]   ;;  %s600_s2 = inlined_call_operand.hbm [shape: f32[8,32], index: 2, kind: input, shape index: {}]   ;;  %s601_s3 = inlined_call_operand.vmem [shape: f32[8,32], index: 3, kind: input, shape index: {}]   ;;  %s602_s4 = inlined_call_operand.hbm [shape: f32[8,128], index: 4, kind: output, shape index: {}]  }
   0x1   :  { %11 = vsyncpa [#allocation7], 0 }
   0x2   :  { %12 = vsyncpa [#allocation5], 0  ;;  %s498_s15 = smov [#allocation3]   ;;  %s499_s17 = smov [#allocation6]  }
   0x3   :  { %s21_s16 = sshll.u32 %s498_s15, 4  ;;  %s31_s18 = sshll.u32 %s499_s17, 4  ;;  %s22_s16 = int_to_ptr.vmem [resolvable:$true] %s21_s16  ;;  %s32_s18 = int_to_ptr.vmem [resolvable:$true] %s31_s18 }
   0x4   :  { %s426_s21 = scalar_lea.hbm %s599_s1, 128 }
   0x5   :  { %p427_p0 = scmp.ne.s32.totalorder %s599_s1, %s426_s21  ;;  %p430_p1 = scmp.lt.u32.totalorder %s426_s21, %s599_s1 }
   0x7   :  { %p432_p2 = pnand %p430_p1, %p427_p0 }
   0x9   :  { %435 = shalt.err (!%p432_p2)
}
   0xa   :  { %s436_s26 = scalar_lea.vmem %s22_s16, 128  ;;  %p441_p4 = scmp.lt.s32.totalorder %s22_s16, %s22_s16 }
   0xb   :  { %p437_p3 = scmp.ne.s32.totalorder %s22_s16, %s436_s26  ;;  %p442_p5 = scmp.lt.s32.totalorder %s436_s26, %s436_s26 }
   0xd   :  { %p443_p6 = por %p442_p5, %p441_p4 }
   0xf   :  { %p444_p7 = pnand %p443_p6, %p437_p3 }
  0x11   :  { %447 = shalt.err (!%p444_p7)
}
  0x12   :  { %24 = dma.hbm_to_vmem [thread:$0]  %s599_s1, 128, %s22_s16, [#allocation4]  }
  0x13   :  { %s448_s5 = scalar_lea.hbm %s600_s2, 128 }
  0x14   :  { %p449_p8 = scmp.ne.s32.totalorder %s600_s2, %s448_s5  ;;  %p452_p9 = scmp.lt.u32.totalorder %s448_s5, %s600_s2 }
  0x16   :  { %p454_p10 = pnand %p452_p9, %p449_p8 }
  0x18   :  { %457 = shalt.err (!%p454_p10)
}
  0x19   :  { %s458_s10 = scalar_lea.vmem %s32_s18, 128  ;;  %p463_p12 = scmp.lt.s32.totalorder %s32_s18, %s32_s18 }
  0x1a   :  { %p459_p11 = scmp.ne.s32.totalorder %s32_s18, %s458_s10  ;;  %p464_p13 = scmp.lt.s32.totalorder %s458_s10, %s458_s10 }
  0x1c   :  { %p465_p0 = por %p464_p13, %p463_p12 }
  0x1e   :  { %p466_p1 = pnand %p465_p0, %p459_p11 }
  0x20   :  { %469 = shalt.err (!%p466_p1)
}
  0x21   :  { %34 = dma.hbm_to_vmem [thread:$0]  %s600_s2, 128, %s32_s18, [#allocation7]  }
  0x22   :  { %492 = dma.done.wait [#allocation4], 128  }
  0x23   :  { %493 = vsyncadd [#allocation4], 4294967168 }
  0x24   :  { %494 = dma.done.wait [#allocation7], 128  }
  0x25   :  { %495 = vsyncadd [#allocation7], 4294967168  ;;  %v500_v0 = vmov 0.0   ;;  %vm501_vm0 = vmmov 0   ;;  %vm49_vm1 = vcmask 261120   ;;  %v45_v1 = vstv %s598_s0  ;;  %v47_v2 = vld [vmem:[#allocation6] sm:$0xff] }
  0x26   :  { %383 = vmatprep.subr.mxu0 %v500_v0  ;;  %388 = vmatprep.subr.mxu1 %v500_v0  ;;  %v558_v3 = vld [vmem:[%s601_s3] sm:$0xff]  ;;  %vm207_vm2 = vcmask 64512   ;;  %vm251_vm3 = vcmask 57344   ;;  %vm220_vm4 = vcmask 7168   ;;  %s502_s19 = smov [#allocation8]  }
  0x27   :  { %385 = vmatprep.mubr.msk.f32.mxu0 %vm501_vm0, %v500_v0  ;;  %390 = vmatprep.mubr.msk.f32.mxu1 %vm501_vm0, %v500_v0  ;;  %v44_v4 = vld [vmem:[#allocation3] sm:$0xff]  ;;  %s365_s20 = sshll.u32 %s502_s19, 4  ;;  %s366_s20 = int_to_ptr.vmem [resolvable:$true] %s365_s20 }
  0x28   :  { %384 = vmatpush3.xpose.msk.msra.mxu0 %vm49_vm1, %v47_v2  ;;  %389 = vmatpush3.xpose.msk.msra.mxu1 %vm49_vm1, %v558_v3  ;;  %v563_v5 = vmul.f32 %v45_v1, %v44_v4  ;;  %s470_s21 = scalar_lea.vmem %s366_s20, 128  ;;  %p475_p3 = scmp.lt.s32.totalorder %s366_s20, %s366_s20 }
  0x29   :  { %p471_p2 = scmp.ne.s32.totalorder %s366_s20, %s470_s21  ;;  %p476_p4 = scmp.lt.s32.totalorder %s470_s21, %s470_s21 }
  0x2a   :  { %v199_v41 = vmul.f32 %v47_v2, %v563_v5  ;;  %v203_v61 = vmul.f32 %v558_v3, %v563_v5 }
  0x2b   :  { %386 = vmatmul.mubr.msk.f32.vlgmr.msra.gmra.mrb[0].mxu0 %vm49_vm1, %v563_v5  ;;  %391 = vmatmul.mubr.msk.f32.vlgmr.msra.gmra.mrb[0].mxu1 %vm49_vm1, %v563_v5  ;;  %p477_p5 = por %p476_p4, %p475_p3 }
  0x2c   :  { %v200_v44 = vsel %vm49_vm1, %v199_v41, 0.0  ;;  %v204_v0 = vsel %vm49_vm1, %v203_v61, 0.0 }
  0x2d   :  { %p478_p6 = pnand %p477_p5, %p471_p2 }
  0xfe   :  { %v122_v6 = vpop.f32.mrb[0].mxu0  ;;  %v195_v7 = vpop.f32.mrb[0].mxu1 }
  0xff   :  { %v387_v8 = vpop.f32.mrb[1].mxu0  ;;  %v208_v9 = vsel %vm207_vm2, %v122_v6, -inf  ;;  %v392_v10 = vpop.f32.mrb[1].mxu1  ;;  %v278_v11 = vsel %vm207_vm2, %v195_v7, -inf }
 0x100   :  { %209 = vmax.xlane.f32.xlu0 %v208_v9  ;;  %v232_v12 = vrot.slane %v208_v9, 4  ;;  %v301_v13 = vrot.slane %v278_v11, 4 }
 0x102   :  { %v233_v14 = vmax.f32 %v208_v9, %v232_v12  ;;  %v302_v15 = vmax.f32 %v278_v11, %v301_v13 }
 0x104   :  { %v234_v16 = vrot.slane %v233_v14, 2  ;;  %v303_v17 = vrot.slane %v302_v15, 2  ;;  %279 = vmax.xlane.f32.xlu0 %v278_v11 }
 0x106   :  { %v235_v18 = vmax.f32 %v233_v14, %v234_v16  ;;  %v304_v19 = vmax.f32 %v302_v15, %v303_v17 }
 0x108   :  { %v236_v20 = vrot.slane %v235_v18, 1  ;;  %v305_v21 = vrot.slane %v304_v19, 1  ;;  %201 = vadd.xlane.f32.xlu0 %v200_v44 }
 0x10a   :  { %v237_v22 = vmax.f32 %v235_v18, %v236_v20  ;;  %v306_v23 = vmax.f32 %v304_v19, %v305_v21 }
 0x10c   :  { %v238_v24 = vsub.f32 %v122_v6, %v237_v22  ;;  %v307_v25 = vsub.f32 %v195_v7, %v306_v23 }
 0x10e   :  { %v239_v26 = vmul.f32 1.442695, %v238_v24  ;;  %v308_v27 = vmul.f32 1.442695, %v307_v25 }
 0x110   :  { %410 = vpow2.f32 %v239_v26 }
 0x111   :  { %412 = vpow2.f32 %v308_v27 }
 0x11a   :  { %v411_v28 = vpop.eup %410 }
 0x11b   :  { %v413_v29 = vpop.eup %412  ;;  %v241_v30 = vsel %vm207_vm2, %v411_v28, 0.0 }
 0x11c   :  { %v242_v31 = vrot.slane %v241_v30, 4  ;;  %v310_v32 = vsel %vm207_vm2, %v413_v29, 0.0 }
 0x11d   :  { %v311_v33 = vrot.slane %v310_v32, 4 }
 0x11e   :  { %v243_v34 = vadd.f32 %v242_v31, %v241_v30 }
 0x11f   :  { %v312_v35 = vadd.f32 %v311_v33, %v310_v32 }
 0x120   :  { %v244_v36 = vrot.slane %v243_v34, 2 }
 0x121   :  { %v313_v37 = vrot.slane %v312_v35, 2 }
 0x122   :  { %v245_v38 = vadd.f32 %v244_v36, %v243_v34 }
 0x123   :  { %v314_v39 = vadd.f32 %v313_v37, %v312_v35 }
 0x124   :  { %v246_v40 = vrot.slane %v245_v38, 1 }
 0x125   :  { %v315_v42 = vrot.slane %v314_v39, 1 }
 0x126   :  { %v247_v43 = vadd.f32 %v246_v40, %v245_v38 }
 0x127   :  { %v316_v45 = vadd.f32 %v315_v42, %v314_v39 }
 0x128   :  { %414 = vlog2.f32 %v247_v43 }
 0x129   :  { %416 = vlog2.f32 %v316_v45 }
 0x132   :  { %v415_v46 = vpop.eup %414 }
 0x133   :  { %v417_v47 = vpop.eup %416  ;;  %v249_v48 = vmul.f32 0.6931472, %v415_v46 }
 0x134   :  { %v318_v49 = vmul.f32 0.6931472, %v417_v47 }
 0x135   :  { %v250_v50 = vadd.f32 %v249_v48, %v237_v22 }
 0x136   :  { %v319_v51 = vadd.f32 %v318_v49, %v306_v23 }
 0x137   :  { %v252_v1 = vsel %vm251_vm3, %v250_v50, 0.0 }
 0x138   :  { %v320_v52 = vsel %vm251_vm3, %v319_v51, 0.0 }
 0x18d   :  { %v210_v53 = vpop.xlane.xlu0 %209 }
 0x18e   :  { %v211_v54 = vsub.f32 %v122_v6, %v210_v53 }
 0x190   :  { %v212_v55 = vmul.f32 1.442695, %v211_v54 }
 0x191   :  { %v280_v56 = vpop.xlane.xlu0 %279 }
 0x192   :  { %418 = vpow2.f32 %v212_v55  ;;  %v281_v57 = vsub.f32 %v195_v7, %v280_v56 }
 0x194   :  { %v282_v58 = vmul.f32 1.442695, %v281_v57 }
 0x195   :  { %v202_v2 = vpop.xlane.xlu0 %201 }
 0x196   :  { %420 = vpow2.f32 %v282_v58  ;;  %v264_v4 = vsel %vm220_vm4, %v202_v2, 0.0 }
 0x197   :  { %265 = vadd.xlane.f32.xlu0 %v264_v4 }
 0x19c   :  { %v419_v59 = vpop.eup %418 }
 0x19d   :  { %v214_v60 = vsel %vm207_vm2, %v419_v59, 0.0  ;;  %v346_v59 = vlaneseq }
 0x19e   :  { %215 = vadd.xlane.f32.xlu1 %v214_v60 }
 0x1a0   :  { %v421_v62 = vpop.eup %420 }
 0x1a1   :  { %v284_v63 = vsel %vm207_vm2, %v421_v62, 0.0 }
 0x1a2   :  { %285 = vadd.xlane.f32.xlu1 %v284_v63 }
 0x1a6   :  { %205 = vadd.xlane.f32.xlu1 %v204_v0  ;;  %v347_v0 = vshrl.u32 %v346_v59, 7 }
 0x1a8   :  { %vm350_vm5 = vcmp.eq.s32.totalorder %v347_v0, 0 }
 0x1aa   :  { %253 = vadd.xlane.f32.xlu1 %v252_v1  ;;  %v349_v1 = vand.u32 127, %v346_v59 }
 0x1ac   :  { %vm351_vm6 = vcmp.eq.s32.totalorder %v349_v1, 0  ;;  %vm354_vm7 = vcmp.eq.s32.totalorder %v349_v1, 1 }
 0x1ad   :  { %vm352_vm8 = vmand %vm350_vm5, %vm351_vm6 }
 0x1ae   :  { %vm355_vm9 = vmand %vm350_vm5, %vm354_vm7 }
 0x224   :  { %v266_v17 = vpop.xlane.xlu0 %265 }
 0x225   :  { %v267_v19 = vrot.slane %v266_v17, 4 }
 0x227   :  { %v268_v21 = vadd.f32 %v267_v19, %v266_v17 }
 0x229   :  { %v269_v23 = vrot.slane %v268_v21, 2 }
 0x22b   :  { %v216_v6 = vpop.xlane.xlu1 %215  ;;  %v270_v30 = vadd.f32 %v269_v23, %v268_v21 }
 0x22c   :  { %422 = vlog2.f32 %v216_v6 }
 0x22d   :  { %v271_v39 = vrot.slane %v270_v30, 1 }
 0x22f   :  { %v286_v7 = vpop.xlane.xlu1 %285  ;;  %v272_v50 = vadd.f32 %v271_v39, %v270_v30 }
 0x230   :  { %424 = vlog2.f32 %v286_v7 }
 0x233   :  { %v206_v14 = vpop.xlane.xlu1 %205 }
 0x234   :  { %v332_v15 = vsel %vm220_vm4, %v206_v14, 0.0 }
 0x236   :  { %v423_v3 = vpop.eup %422 }
 0x237   :  { %v218_v5 = vmul.f32 0.6931472, %v423_v3  ;;  %v254_v16 = vpop.xlane.xlu1 %253 }
 0x238   :  { %v255_v18 = vrot.slane %v254_v16, 4 }
 0x239   :  { %v219_v8 = vadd.f32 %v218_v5, %v210_v53 }
 0x23a   :  { %v425_v9 = vpop.eup %424  ;;  %v256_v20 = vadd.f32 %v255_v18, %v254_v16 }
 0x23b   :  { %v288_v10 = vmul.f32 0.6931472, %v425_v9  ;;  %v221_v11 = vsel %vm220_vm4, %v219_v8, 0.0 }
 0x23c   :  { %222 = vadd.xlane.f32.xlu0 %v221_v11  ;;  %v257_v22 = vrot.slane %v256_v20, 2 }
 0x23d   :  { %v289_v12 = vadd.f32 %v288_v10, %v280_v56 }
 0x23e   :  { %v258_v29 = vadd.f32 %v257_v22, %v256_v20 }
 0x23f   :  { %v290_v13 = vsel %vm220_vm4, %v289_v12, 0.0 }
 0x240   :  { %321 = vadd.xlane.f32.xlu0 %v320_v52  ;;  %291 = vadd.xlane.f32.xlu1 %v290_v13  ;;  %v259_v38 = vrot.slane %v258_v29, 1 }
 0x242   :  { %v260_v48 = vadd.f32 %v259_v38, %v258_v29 }
 0x244   :  { %333 = vadd.xlane.f32.xlu1 %v332_v15 }
 0x2c9   :  { %v223_v24 = vpop.xlane.xlu0 %222 }
 0x2ca   :  { %v224_v25 = vrot.slane %v223_v24, 4 }
 0x2cc   :  { %v225_v26 = vadd.f32 %v224_v25, %v223_v24 }
 0x2cd   :  { %v322_v27 = vpop.xlane.xlu0 %321  ;;  %v292_v28 = vpop.xlane.xlu1 %291 }
 0x2ce   :  { %v226_v31 = vrot.slane %v225_v26, 2  ;;  %v323_v32 = vrot.slane %v322_v27, 4  ;;  %v293_v33 = vrot.slane %v292_v28, 4 }
 0x2d0   :  { %v324_v34 = vadd.f32 %v323_v32, %v322_v27  ;;  %v294_v35 = vadd.f32 %v293_v33, %v292_v28  ;;  %v227_v36 = vadd.f32 %v226_v31, %v225_v26 }
 0x2d1   :  { %v334_v37 = vpop.xlane.xlu1 %333 }
 0x2d2   :  { %v325_v40 = vrot.slane %v324_v34, 2  ;;  %v295_v41 = vrot.slane %v294_v35, 2  ;;  %v335_v42 = vrot.slane %v334_v37, 4  ;;  %v228_v43 = vrot.slane %v227_v36, 1 }
 0x2d4   :  { %v326_v44 = vadd.f32 %v325_v40, %v324_v34  ;;  %v336_v45 = vadd.f32 %v335_v42, %v334_v37  ;;  %v229_v46 = vadd.f32 %v228_v43, %v227_v36  ;;  %v296_v47 = vadd.f32 %v295_v41, %v294_v35 }
 0x2d6   :  { %v337_v49 = vrot.slane %v336_v45, 2  ;;  %393 = vpush %v229_v46  ;;  %v297_v51 = vrot.slane %v296_v47, 1  ;;  %v327_v52 = vrot.slane %v326_v44, 1 }
 0x2d7   :  { %395 = vpush %v260_v48 }
 0x2d8   :  { %v338_v53 = vadd.f32 %v337_v49, %v336_v45  ;;  %397 = vpush %v272_v50  ;;  %v298_v54 = vadd.f32 %v297_v51, %v296_v47  ;;  %v328_v55 = vadd.f32 %v327_v52, %v326_v44 }
 0x2da   :  { %399 = vpush %v298_v54  ;;  %v339_v56 = vrot.slane %v338_v53, 1 }
 0x2db   :  { %401 = vpush %v328_v55 }
 0x2dc   :  { %v340_v57 = vadd.f32 %v339_v56, %v338_v53 }
 0x2de   :  { %403 = vpush %v340_v57 }
 0x307   :  { %s394_s0 = spop %393 }
 0x308   :  { %v231_v58 = vstv %s394_s0  ;;  %s396_s2 = spop %395 }
 0x309   :  { %v262_v60 = vstv %s396_s2  ;;  %s398_s3 = spop %397 }
 0x30a   :  { %v274_v61 = vstv %s398_s3  ;;  %v263_v62 = vadd.f32 %v262_v60, %v231_v58 }
 0x30b   :  { %v275_v63 = vmul.f32 2.0, %v274_v61  ;;  %s400_s16 = spop %399 }
 0x30c   :  { %s402_s17 = spop %401  ;;  %v300_v2 = vstv %s400_s16 }
 0x30d   :  { %v330_v4 = vstv %s402_s17  ;;  %v276_v6 = vsub.f32 %v263_v62, %v275_v63 }
 0x30e   :  { %v331_v3 = vadd.f32 %v330_v4, %v300_v2 }
 0x30f   :  { %s404_s18 = spop %403  ;;  %v277_v8 = vmul.f32 0.0625, %v276_v6 }
 0x310   :  { %v342_v7 = vstv %s404_s18 }
 0x311   :  { %v343_v5 = vmul.f32 2.0, %v342_v7  ;;  %v353_v12 = vsel %vm352_vm8, %v277_v8, 0.0 }
 0x313   :  { %v344_v9 = vsub.f32 %v331_v3, %v343_v5 }
 0x315   :  { %v345_v10 = vmul.f32 0.0625, %v344_v9 }
 0x317   :  { %v356_v11 = vsel %vm355_vm9, %v345_v10, 0.0 }
 0x318   :  { %v357_v13 = vadd.f32 %v356_v11, %v353_v12 }
 0x31a   :  { %358 = vst [vmem:[#allocation8] sm:$0xff] %v357_v13 }
 0x31b   :  { %481 = shalt.err (!%p478_p6)
}
 0x31c   :  { %s482_s24 = scalar_lea.hbm %s602_s4, 128 }
 0x31d   :  { %p483_p7 = scmp.ne.s32.totalorder %s602_s4, %s482_s24  ;;  %p486_p8 = scmp.lt.u32.totalorder %s482_s24, %s602_s4 }
 0x31f   :  { %p488_p9 = pnand %p486_p8, %p483_p7 }
 0x321   :  { %491 = shalt.err (!%p488_p9)
}
 0x322   :  { %368 = dma.vmem_to_hbm [thread:$0]  %s366_s20, 128, %s602_s4, [#allocation5]  }
 0x323   :  { %496 = dma.done.wait [#allocation5], 128  }
 0x324   :  { %497 = vsyncadd [#allocation5], 4294967168 }
 0x325   :  { %372 = vsyncpa [#allocation4], 1 }
 0x326   :  { %373 = vsyncpa [#allocation7], 1 }
 0x327   :  { %374 = vsyncpa [#allocation5], 1 }

</bundles_post_ra>
